<compile_context>
chip_gen: v7x
topology: tpu7x:2x2x1
jax: 0.10.0
libtpu: 0.0.40
codegen_flags: <defaults>
</compile_context>

<pallas_src>
import jax
import jax.numpy as jnp
from jax.experimental import pallas as pl
from jax.experimental.pallas import tpu as pltpu
import numpy as np

F_IN = 310                       # raw input feature width (fed unpadded)
H1, H2, H3, N_CLS = 256, 128, 64, 4
H3_PAD = 128                     # lane-padded width for layer-3 output
OUT_W = 128                      # single output slab: lanes 0..63 feats, 64..67 logits


def _deepcoral_kernel(x_ref, w1_ref, w2_ref, w3_ref, w4_ref, bias_ref, out_ref):
    """Fused MLP + classifier for one batch tile.

    MXU matmuls (bf16 inputs, f32 accumulation), VPU LeakyReLU / bias adds in
    f32, one lane-dense (TB, 128) f32 store combining feats and logits.
    """
    leaky = lambda h: jnp.where(h >= 0, h, 0.01 * h)
    bf16 = jnp.bfloat16

    # Packed bias slab (4, 256): row0=b1, row1=b2(+pad), row2=b3(+pad),
    # row3=b4 placed at lanes 64..67 (rest zero).
    b1 = bias_ref[0:1, :]
    b2 = bias_ref[1:2, 0:H2]
    b3 = bias_ref[2:3, 0:H3_PAD]
    b4 = bias_ref[3:4, 0:OUT_W]

    # In-kernel bf16 cast of the raw f32 tile (no host-side pad/cast pre-pass).
    x_bf = x_ref[...].astype(bf16)                                 # (TB, 310)

    # Layer 1: (TB,310) @ (310,256) — Mosaic pads K internally.
    h = leaky(jnp.dot(x_bf, w1_ref[...],
                      preferred_element_type=jnp.float32) + b1)
    # Layer 2: (TB,256) @ (256,128)
    h = leaky(jnp.dot(h.astype(bf16), w2_ref[...],
                      preferred_element_type=jnp.float32) + b2)
    # Layer 3: (TB,128) @ (128,128) — columns 64..127 of w3/b3 are zero,
    # so feats lanes 64..127 are exactly 0 (leaky(0) == 0).
    feats = leaky(jnp.dot(h.astype(bf16), w3_ref[...],
                          preferred_element_type=jnp.float32) + b3)
    # Classifier: (TB,128) @ (128,128) — real weights/bias live only in output
    # columns 64..67, so logits lanes 0..63 / 68..127 are exactly 0.
    logits = jnp.dot(feats.astype(bf16), w4_ref[...],
                     preferred_element_type=jnp.float32) + b4

    # Single lane-dense, unmasked f32 store: feats in lanes 0..63, logits 64..67.
    out_ref[...] = feats + logits


def _choose_tiling(B):
    """Pick (batch tile, n_tiles). Rows are independent, so partial edge tiles
    are safe (OOB input rows are garbage, OOB output rows are dropped)."""
    if B >= 2048:
        return 1024, pl.cdiv(B, 1024)      # big streaming tiles, >= 2 of them
    if B >= 128 and (B // 2) % 8 == 0:
        return B // 2, 2                   # two even tiles -> both v7x TCs busy
    return B, 1                            # single full-batch tile (block == array dims)


def _shared_and_cls(x, kparams):
    """sharedNet + cls_fc on (B, 310) input; returns (logits (B,4), feats (B,64))."""
    w1p, w2p, w3p, w4p, bias_slab = kparams
    B = x.shape[0]
    TB, n_tiles = _choose_tiling(B)

    flops = 2 * B * (F_IN * H1 + H1 * H2 + H2 * H3_PAD + H3_PAD * OUT_W)
    bytes_accessed = (B * F_IN * x.dtype.itemsize
                      + 2 * (w1p.size + w2p.size + w3p.size + w4p.size)
                      + 4 * bias_slab.size
                      + 4 * B * OUT_W)

    out = pl.pallas_call(
        _deepcoral_kernel,
        out_shape=jax.ShapeDtypeStruct((B, OUT_W), jnp.float32),
        grid=(n_tiles,),
        in_specs=[
            pl.BlockSpec((TB, F_IN), lambda i: (i, 0)),        # streamed x tile (raw f32)
            pl.BlockSpec((F_IN, H1), lambda i: (0, 0)),        # w1 (VMEM-resident)
            pl.BlockSpec((H1, H2), lambda i: (0, 0)),          # w2
            pl.BlockSpec((H2, H3_PAD), lambda i: (0, 0)),      # w3 (zero-padded cols)
            pl.BlockSpec((H3_PAD, OUT_W), lambda i: (0, 0)),   # w4 (cols 64..67 real)
            pl.BlockSpec((4, H1), lambda i: (0, 0)),           # packed biases
        ],
        out_specs=pl.BlockSpec((TB, OUT_W), lambda i: (i, 0)),
        compiler_params=pltpu.CompilerParams(
            dimension_semantics=("parallel",)),
        cost_estimate=pl.CostEstimate(flops=flops, transcendentals=0,
                                      bytes_accessed=bytes_accessed),
    )(x, w1p, w2p, w3p, w4p, bias_slab)

    # Two cheap column slices of the lane-dense slab (no row slicing needed).
    feats = out[:, :H3]
    logits = out[:, H3:H3 + N_CLS]
    return logits, feats


def deepcoral_forward(data_src, kparams, data_tgt=0, training=False):
    """Mirrors DeepCoraltmp.forward: returns (cls(feat_src), loss, feat_src, data_tgt)."""
    logits_src, feats_src = _shared_and_cls(data_src, kparams)
    loss = jnp.float32(0.0)
    tgt_out = data_tgt
    if training:
        _, tgt_out = _shared_and_cls(data_tgt, kparams)
        # TODO(synk): utils.CORAL is not defined in the provided spec; CORAL loss omitted (loss stays 0).
    return logits_src, loss, feats_src, tgt_out


def init_params(key):
    """Deterministic synthetic parameters matching the PyTorch layer shapes/init."""
    ks = jax.random.split(key, 4)

    def linear(k, fin, fout):
        kw, kb = jax.random.split(k)
        bound = 1.0 / np.sqrt(fin)
        w = jax.random.uniform(kw, (fin, fout), jnp.float32, -bound, bound)
        b = jax.random.uniform(kb, (1, fout), jnp.float32, -bound, bound)
        return w, b

    w1, b1 = linear(ks[0], F_IN, H1)
    w2, b2 = linear(ks[1], H1, H2)
    w3, b3 = linear(ks[2], H2, H3)
    w4, b4 = linear(ks[3], H3, N_CLS)
    return (w1, b1, w2, b2, w3, b3, w4, b4)


def prepare_kernel_params(raw):
    """Pad / cast / pack raw f32 params into the kernel-ready form (done once)."""
    (w1, b1, w2, b2, w3, b3, w4, b4) = raw
    bf16 = jnp.bfloat16
    w1p = w1.astype(bf16)                                            # (310, 256)
    w2p = w2.astype(bf16)                                            # (256, 128)
    w3p = jnp.zeros((H2, H3_PAD), bf16).at[:, :H3].set(w3.astype(bf16))
    # Classifier weights land in output lanes 64..67 of the 128-wide slab.
    w4p = jnp.zeros((H3_PAD, OUT_W), bf16).at[:H3, H3:H3 + N_CLS].set(w4.astype(bf16))
    bias = jnp.zeros((4, H1), jnp.float32)
    bias = bias.at[0, :H1].set(b1[0])
    bias = bias.at[1, :H2].set(b2[0])
    bias = bias.at[2, :H3].set(b3[0])
    bias = bias.at[3, H3:H3 + N_CLS].set(b4[0])
    return (w1p, w2p, w3p, w4p, bias)


def reference_forward(x, raw):
    """Pure-JAX reference with identical numerics (bf16 matmul inputs, f32 accum)."""
    (w1, b1, w2, b2, w3, b3, w4, b4) = raw
    bf16 = jnp.bfloat16
    leaky = lambda h: jnp.where(h >= 0, h, 0.01 * h)
    h = leaky(jnp.dot(x.astype(bf16), w1.astype(bf16),
                      preferred_element_type=jnp.float32) + b1)
    h = leaky(jnp.dot(h.astype(bf16), w2.astype(bf16),
                      preferred_element_type=jnp.float32) + b2)
    feats = leaky(jnp.dot(h.astype(bf16), w3.astype(bf16),
                          preferred_element_type=jnp.float32) + b3)
    logits = jnp.dot(feats.astype(bf16), w4.astype(bf16),
                     preferred_element_type=jnp.float32) + b4
    return logits, feats


if __name__ == "__main__":
    key = jax.random.PRNGKey(0)
    k_params, k_x = jax.random.split(key)

    raw_params = init_params(k_params)
    kparams = prepare_kernel_params(raw_params)

    B = 8
    x = jax.random.normal(k_x, (B, F_IN), jnp.float32)

    logits, loss, feats, _ = deepcoral_forward(x, kparams, training=False)
    logits = jax.block_until_ready(logits)
    feats = jax.block_until_ready(feats)

    ref_logits, ref_feats = reference_forward(x, raw_params)
    np.testing.assert_allclose(np.asarray(logits), np.asarray(ref_logits),
                               rtol=1e-3, atol=1e-3)
    np.testing.assert_allclose(np.asarray(feats), np.asarray(ref_feats),
                               rtol=1e-3, atol=1e-3)
    assert logits.shape == (B, N_CLS) and feats.shape == (B, H3)
    assert float(loss) == 0.0
    print("KERNEL_OK")
</pallas_src>

<mosaic_0001>
module attributes {stable_mosaic.version = 11 : i64} {
  func.func @_deepcoral_kernel(%arg0: i32, %arg1: memref<8x310xf32, #tpu.memory_space<vmem>>, %arg2: memref<310x256xbf16, #tpu.memory_space<vmem>>, %arg3: memref<256x128xbf16, #tpu.memory_space<vmem>>, %arg4: memref<128x128xbf16, #tpu.memory_space<vmem>>, %arg5: memref<128x128xbf16, #tpu.memory_space<vmem>>, %arg6: memref<4x256xf32, #tpu.memory_space<vmem>>, %arg7: memref<8x128xf32, #tpu.memory_space<vmem>>) attributes {dimension_semantics = [#tpu.dimension_semantics<parallel>], iteration_bounds = array<i64: 1>, scalar_prefetch = 0 : i64, scratch_operands = 0 : i64, tpu.core_type = #tpu.core_type<tc>, window_params = [{transform_indices = @transform_0, window_bounds = array<i64: 8, 310>}, {pipeline_mode = #tpu.pipeline_mode<synchronous>, transform_indices = @transform_1, window_bounds = array<i64: 310, 256>}, {pipeline_mode = #tpu.pipeline_mode<synchronous>, transform_indices = @transform_2, window_bounds = array<i64: 256, 128>}, {pipeline_mode = #tpu.pipeline_mode<synchronous>, transform_indices = @transform_3, window_bounds = array<i64: 128, 128>}, {pipeline_mode = #tpu.pipeline_mode<synchronous>, transform_indices = @transform_4, window_bounds = array<i64: 128, 128>}, {pipeline_mode = #tpu.pipeline_mode<synchronous>, transform_indices = @transform_5, window_bounds = array<i64: 4, 256>}, {transform_indices = @transform_6, window_bounds = array<i64: 8, 128>}]} {
    %c0 = arith.constant 0 : index
    %c0_0 = arith.constant 0 : index
    %0 = vector.load %arg6[%c0, %c0_0] : memref<4x256xf32, #tpu.memory_space<vmem>>, vector<1x256xf32>
    %c1 = arith.constant 1 : index
    %c0_1 = arith.constant 0 : index
    %1 = vector.load %arg6[%c1, %c0_1] : memref<4x256xf32, #tpu.memory_space<vmem>>, vector<1x128xf32>
    %c2 = arith.constant 2 : index
    %c0_2 = arith.constant 0 : index
    %2 = vector.load %arg6[%c2, %c0_2] : memref<4x256xf32, #tpu.memory_space<vmem>>, vector<1x128xf32>
    %c3 = arith.constant 3 : index
    %c0_3 = arith.constant 0 : index
    %3 = vector.load %arg6[%c3, %c0_3] : memref<4x256xf32, #tpu.memory_space<vmem>>, vector<1x128xf32>
    %c0_4 = arith.constant 0 : index
    %c0_5 = arith.constant 0 : index
    %4 = vector.load %arg1[%c0_4, %c0_5] : memref<8x310xf32, #tpu.memory_space<vmem>>, vector<8x310xf32>
    %5 = arith.truncf %4 : vector<8x310xf32> to vector<8x310xbf16>
    %c0_6 = arith.constant 0 : index
    %c0_7 = arith.constant 0 : index
    %6 = vector.load %arg2[%c0_6, %c0_7] : memref<310x256xbf16, #tpu.memory_space<vmem>>, vector<310x256xbf16>
    %cst = arith.constant dense<0.000000e+00> : vector<8x256xf32>
    %7 = tpu.matmul %5, %6, %cst {dimension_numbers = #tpu.dot_dimension_numbers<[1], [0], [0], [1], [0, 0, 1, 1], [], []>} : vector<8x310xbf16>, vector<310x256xbf16>, vector<8x256xf32> -> vector<8x256xf32>
    %8 = vector.broadcast %0 : vector<1x256xf32> to vector<8x256xf32>
    %9 = arith.addf %7, %8 : vector<8x256xf32>
    %cst_8 = arith.constant 0.000000e+00 : f32
    %10 = vector.broadcast %cst_8 : f32 to vector<8x256xf32>
    %11 = arith.cmpf oge, %9, %10 : vector<8x256xf32>
    %cst_9 = arith.constant 0.00999999977 : f32
    %12 = vector.broadcast %cst_9 : f32 to vector<8x256xf32>
    %13 = arith.mulf %12, %9 : vector<8x256xf32>
    %14 = arith.select %11, %9, %13 : vector<8x256xi1>, vector<8x256xf32>
    %15 = arith.truncf %14 : vector<8x256xf32> to vector<8x256xbf16>
    %c0_10 = arith.constant 0 : index
    %c0_11 = arith.constant 0 : index
    %16 = vector.load %arg3[%c0_10, %c0_11] : memref<256x128xbf16, #tpu.memory_space<vmem>>, vector<256x128xbf16>
    %cst_12 = arith.constant dense<0.000000e+00> : vector<8x128xf32>
    %17 = tpu.matmul %15, %16, %cst_12 {dimension_numbers = #tpu.dot_dimension_numbers<[1], [0], [0], [1], [0, 0, 1, 1], [], []>} : vector<8x256xbf16>, vector<256x128xbf16>, vector<8x128xf32> -> vector<8x128xf32>
    %18 = vector.broadcast %1 : vector<1x128xf32> to vector<8x128xf32>
    %19 = arith.addf %17, %18 : vector<8x128xf32>
    %cst_13 = arith.constant 0.000000e+00 : f32
    %20 = vector.broadcast %cst_13 : f32 to vector<8x128xf32>
    %21 = arith.cmpf oge, %19, %20 : vector<8x128xf32>
    %cst_14 = arith.constant 0.00999999977 : f32
    %22 = vector.broadcast %cst_14 : f32 to vector<8x128xf32>
    %23 = arith.mulf %22, %19 : vector<8x128xf32>
    %24 = arith.select %21, %19, %23 : vector<8x128xi1>, vector<8x128xf32>
    %25 = arith.truncf %24 : vector<8x128xf32> to vector<8x128xbf16>
    %c0_15 = arith.constant 0 : index
    %c0_16 = arith.constant 0 : index
    %26 = vector.load %arg4[%c0_15, %c0_16] : memref<128x128xbf16, #tpu.memory_space<vmem>>, vector<128x128xbf16>
    %cst_17 = arith.constant dense<0.000000e+00> : vector<8x128xf32>
    %27 = tpu.matmul %25, %26, %cst_17 {dimension_numbers = #tpu.dot_dimension_numbers<[1], [0], [0], [1], [0, 0, 1, 1], [], []>} : vector<8x128xbf16>, vector<128x128xbf16>, vector<8x128xf32> -> vector<8x128xf32>
    %28 = vector.broadcast %2 : vector<1x128xf32> to vector<8x128xf32>
    %29 = arith.addf %27, %28 : vector<8x128xf32>
    %cst_18 = arith.constant 0.000000e+00 : f32
    %30 = vector.broadcast %cst_18 : f32 to vector<8x128xf32>
    %31 = arith.cmpf oge, %29, %30 : vector<8x128xf32>
    %cst_19 = arith.constant 0.00999999977 : f32
    %32 = vector.broadcast %cst_19 : f32 to vector<8x128xf32>
    %33 = arith.mulf %32, %29 : vector<8x128xf32>
    %34 = arith.select %31, %29, %33 : vector<8x128xi1>, vector<8x128xf32>
    %35 = arith.truncf %34 : vector<8x128xf32> to vector<8x128xbf16>
    %c0_20 = arith.constant 0 : index
    %c0_21 = arith.constant 0 : index
    %36 = vector.load %arg5[%c0_20, %c0_21] : memref<128x128xbf16, #tpu.memory_space<vmem>>, vector<128x128xbf16>
    %cst_22 = arith.constant dense<0.000000e+00> : vector<8x128xf32>
    %37 = tpu.matmul %35, %36, %cst_22 {dimension_numbers = #tpu.dot_dimension_numbers<[1], [0], [0], [1], [0, 0, 1, 1], [], []>} : vector<8x128xbf16>, vector<128x128xbf16>, vector<8x128xf32> -> vector<8x128xf32>
    %38 = vector.broadcast %3 : vector<1x128xf32> to vector<8x128xf32>
    %39 = arith.addf %37, %38 : vector<8x128xf32>
    %40 = arith.addf %34, %39 : vector<8x128xf32>
    %c0_23 = arith.constant 0 : index
    %c0_24 = arith.constant 0 : index
    %41 = vector.load %arg7[%c0_23, %c0_24] : memref<8x128xf32, #tpu.memory_space<vmem>>, vector<8x128xf32>
    tpu.vector_store %arg7[%c0_23, %c0_24], %40 {strides = array<i32>} : memref<8x128xf32, #tpu.memory_space<vmem>>, vector<8x128xf32>,
    return
  }
  func.func @transform_0(%arg0: i32) -> (i32, i32) {
    %c0_i32 = arith.constant 0 : i32
    %c0_i32_0 = arith.constant 0 : i32
    return %arg0, %c0_i32 : i32, i32
  }
  func.func @transform_1(%arg0: i32) -> (i32, i32) {
    %c0_i32 = arith.constant 0 : i32
    %c0_i32_0 = arith.constant 0 : i32
    %c0_i32_1 = arith.constant 0 : i32
    return %c0_i32, %c0_i32_0 : i32, i32
  }
  func.func @transform_2(%arg0: i32) -> (i32, i32) {
    %c0_i32 = arith.constant 0 : i32
    %c0_i32_0 = arith.constant 0 : i32
    %c0_i32_1 = arith.constant 0 : i32
    return %c0_i32, %c0_i32_0 : i32, i32
  }
  func.func @transform_3(%arg0: i32) -> (i32, i32) {
    %c0_i32 = arith.constant 0 : i32
    %c0_i32_0 = arith.constant 0 : i32
    %c0_i32_1 = arith.constant 0 : i32
    return %c0_i32, %c0_i32_0 : i32, i32
  }
  func.func @transform_4(%arg0: i32) -> (i32, i32) {
    %c0_i32 = arith.constant 0 : i32
    %c0_i32_0 = arith.constant 0 : i32
    %c0_i32_1 = arith.constant 0 : i32
    return %c0_i32, %c0_i32_0 : i32, i32
  }
  func.func @transform_5(%arg0: i32) -> (i32, i32) {
    %c0_i32 = arith.constant 0 : i32
    %c0_i32_0 = arith.constant 0 : i32
    %c0_i32_1 = arith.constant 0 : i32
    return %c0_i32, %c0_i32_0 : i32, i32
  }
  func.func @transform_6(%arg0: i32) -> (i32, i32) {
    %c0_i32 = arith.constant 0 : i32
    %c0_i32_0 = arith.constant 0 : i32
    return %arg0, %c0_i32 : i32, i32
  }
}

</mosaic_0001>

<bundles_post_ra>
// kernel: tpu_custom_call.1
= control target key start
LH: loop header
LB: loop body
LE: loop exit
PB: predicated region body
PF: predicated region fallthrough
CT: control target
= control target key end

     0   :  { %11 = vsyncpa [#allocation3], 0  ;;  %s1430_s0 = inlined_call_operand.hbm [shape: f32[8,310], index: 0, kind: input, shape index: {}]   ;;  %s1431_s1 = inlined_call_operand.hbm [shape: bf16[310,256], index: 1, kind: input, shape index: {}]   ;;  %s1432_s2 = inlined_call_operand.hbm [shape: bf16[256,128], index: 2, kind: input, shape index: {}]   ;;  %s1433_s3 = inlined_call_operand.hbm [shape: bf16[128,128], index: 3, kind: input, shape index: {}]   ;;  %s1434_s4 = inlined_call_operand.hbm [shape: bf16[128,128], index: 4, kind: input, shape index: {}]   ;;  %s1435_s5 = inlined_call_operand.vmem [shape: f32[4,256], index: 5, kind: input, shape index: {}]   ;;  %s1436_s6 = inlined_call_operand.hbm [shape: f32[8,128], index: 6, kind: output, shape index: {}]  }
   0x1   :  { %12 = vsyncpa [#allocation6], 0 }
   0x2   :  { %13 = vsyncpa [#allocation9], 0 }
   0x3   :  { %14 = vsyncpa [#allocation4], 0  ;;  %s1269_s21 = smov [#allocation5]   ;;  %s1129_s25 = scalar_lea.hbm %s1431_s1, 4992 }
   0x4   :  { %s30_s22 = sshll.u32 %s1269_s21, 4  ;;  %p1130_p0 = scmp.ne.s32.totalorder %s1431_s1, %s1129_s25  ;;  %s31_s22 = int_to_ptr.vmem [resolvable:$true] %s30_s22 }
   0x5   :  { %p1133_p1 = scmp.lt.u32.totalorder %s1129_s25, %s1431_s1 }
   0x7   :  { %p1135_p2 = pnand %p1133_p1, %p1130_p0 }
   0x9   :  { %1138 = shalt.err (!%p1135_p2)
}
   0xa   :  { %s1139_s30 = scalar_lea.vmem %s31_s22, 4992  ;;  %p1144_p4 = scmp.lt.s32.totalorder %s31_s22, %s31_s22 }
   0xb   :  { %p1140_p3 = scmp.ne.s32.totalorder %s31_s22, %s1139_s30  ;;  %p1145_p5 = scmp.lt.s32.totalorder %s1139_s30, %s1139_s30 }
   0xd   :  { %p1146_p6 = por %p1145_p5, %p1144_p4 }
   0xf   :  { %p1147_p7 = pnand %p1146_p6, %p1140_p3 }
  0x11   :  { %1150 = shalt.err (!%p1147_p7)
}
  0x12   :  { %s1270_s7 = smov 128   ;;  %s1271_s8 = smov 8  }
  0x13   :  { %36 = dma.hbm_to_vmem [thread:$0]  %s1431_s1, 4992, %s31_s22, [#allocation6], %s1270_s7, %s1270_s7, %s1271_s8  }
  0x14   :  { %s1272_s11 = smov [#allocation8]   ;;  %s1273_s13 = smov [#allocation2]  }
  0x15   :  { %s54_s12 = sshll.u32 %s1272_s11, 4  ;;  %s21_s14 = sshll.u32 %s1273_s13, 4  ;;  %s55_s12 = int_to_ptr.vmem [resolvable:$true] %s54_s12  ;;  %s22_s14 = int_to_ptr.vmem [resolvable:$true] %s21_s14 }
  0x16   :  { %s1151_s17 = scalar_lea.hbm %s1433_s3, 1024 }
  0x17   :  { %p1152_p8 = scmp.ne.s32.totalorder %s1433_s3, %s1151_s17  ;;  %p1155_p9 = scmp.lt.u32.totalorder %s1151_s17, %s1433_s3 }
  0x19   :  { %p1157_p10 = pnand %p1155_p9, %p1152_p8 }
  0x1b   :  { %1160 = shalt.err (!%p1157_p10)
}
  0x1c   :  { %s1161_s1 = scalar_lea.vmem %s55_s12, 1024  ;;  %p1166_p12 = scmp.lt.s32.totalorder %s55_s12, %s55_s12 }
  0x1d   :  { %p1162_p11 = scmp.ne.s32.totalorder %s55_s12, %s1161_s1  ;;  %p1167_p13 = scmp.lt.s32.totalorder %s1161_s1, %s1161_s1 }
  0x1f   :  { %p1168_p0 = por %p1167_p13, %p1166_p12 }
  0x21   :  { %p1169_p1 = pnand %p1168_p0, %p1162_p11 }
  0x23   :  { %1172 = shalt.err (!%p1169_p1)
}
  0x24   :  { %s1274_s22 = smov 64   ;;  %s1275_s23 = smov 4  }
  0x25   :  { %60 = dma.hbm_to_vmem [thread:$0]  %s1433_s3, 1024, %s55_s12, [#allocation9], %s1274_s22, %s1274_s22, %s1275_s23  }
  0x26   :  { %s1173_s28 = scalar_lea.hbm %s1430_s0, 384 }
  0x27   :  { %p1174_p2 = scmp.ne.s32.totalorder %s1430_s0, %s1173_s28  ;;  %p1177_p3 = scmp.lt.u32.totalorder %s1173_s28, %s1430_s0 }
  0x29   :  { %p1179_p4 = pnand %p1177_p3, %p1174_p2 }
  0x2b   :  { %1182 = shalt.err (!%p1179_p4)
}
  0x2c   :  { %s1183_s9 = scalar_lea.vmem %s22_s14, 384  ;;  %p1188_p6 = scmp.lt.s32.totalorder %s22_s14, %s22_s14 }
  0x2d   :  { %p1184_p5 = scmp.ne.s32.totalorder %s22_s14, %s1183_s9  ;;  %p1189_p7 = scmp.lt.s32.totalorder %s1183_s9, %s1183_s9 }
  0x2f   :  { %p1190_p8 = por %p1189_p7, %p1188_p6 }
  0x31   :  { %p1191_p9 = pnand %p1190_p8, %p1184_p5 }
  0x33   :  { %1194 = shalt.err (!%p1191_p9)
}
  0x34   :  { %24 = dma.hbm_to_vmem [thread:$0]  %s1430_s0, 384, %s22_s14, [#allocation3]  }
  0x35   :  { %s1276_s11 = smov [#allocation7]   ;;  %s1277_s13 = smov [#allocation10]  }
  0x36   :  { %s42_s12 = sshll.u32 %s1276_s11, 4  ;;  %s66_s15 = sshll.u32 %s1277_s13, 4  ;;  %s43_s12 = int_to_ptr.vmem [resolvable:$true] %s42_s12  ;;  %s67_s15 = int_to_ptr.vmem [resolvable:$true] %s66_s15 }
  0x37   :  { %s1195_s18 = scalar_lea.hbm %s1432_s2, 2048 }
  0x38   :  { %p1196_p10 = scmp.ne.s32.totalorder %s1432_s2, %s1195_s18  ;;  %p1199_p11 = scmp.lt.u32.totalorder %s1195_s18, %s1432_s2 }
  0x3a   :  { %p1201_p12 = pnand %p1199_p11, %p1196_p10 }
  0x3c   :  { %1204 = shalt.err (!%p1201_p12)
}
  0x3d   :  { %s1205_s0 = scalar_lea.vmem %s43_s12, 2048  ;;  %p1210_p0 = scmp.lt.s32.totalorder %s43_s12, %s43_s12 }
  0x3e   :  { %p1206_p13 = scmp.ne.s32.totalorder %s43_s12, %s1205_s0  ;;  %p1211_p1 = scmp.lt.s32.totalorder %s1205_s0, %s1205_s0 }
  0x40   :  { %p1212_p2 = por %p1211_p1, %p1210_p0 }
  0x42   :  { %p1213_p3 = pnand %p1212_p2, %p1206_p13 }
  0x44   :  { %1216 = shalt.err (!%p1213_p3)
}
  0x45   :  { %48 = dma.hbm_to_vmem [thread:$0]  %s1432_s2, 2048, %s43_s12, [#allocation6], %s1274_s22, %s1274_s22, %s1275_s23  }
  0x46   :  { %s1217_s27 = scalar_lea.hbm %s1434_s4, 1024 }
  0x47   :  { %p1218_p4 = scmp.ne.s32.totalorder %s1434_s4, %s1217_s27  ;;  %p1221_p5 = scmp.lt.u32.totalorder %s1217_s27, %s1434_s4 }
  0x49   :  { %p1223_p6 = pnand %p1221_p5, %p1218_p4 }
  0x4b   :  { %1226 = shalt.err (!%p1223_p6)
}
  0x4c   :  { %s1227_s8 = scalar_lea.vmem %s67_s15, 1024  ;;  %p1232_p8 = scmp.lt.s32.totalorder %s67_s15, %s67_s15 }
  0x4d   :  { %p1228_p7 = scmp.ne.s32.totalorder %s67_s15, %s1227_s8  ;;  %p1233_p9 = scmp.lt.s32.totalorder %s1227_s8, %s1227_s8 }
  0x4f   :  { %p1234_p10 = por %p1233_p9, %p1232_p8 }
  0x51   :  { %p1235_p11 = pnand %p1234_p10, %p1228_p7 }
  0x53   :  { %1238 = shalt.err (!%p1235_p11)
}
  0x54   :  { %72 = dma.hbm_to_vmem [thread:$0]  %s1434_s4, 1024, %s67_s15, [#allocation9], %s1274_s22, %s1274_s22, %s1275_s23  }
  0x55   :  { %1261 = dma.done.wait [#allocation3], 384  }
  0x56   :  { %1262 = vsyncadd [#allocation3], 4294966912 }
  0x57   :  { %1263 = dma.done.wait [#allocation6], 7040  }
  0x58   :  { %1264 = vsyncadd [#allocation6], 4294960256 }
  0x59   :  { %1265 = dma.done.wait [#allocation9], 2048  }
  0x5a   :  { %1266 = vsyncadd [#allocation9], 4294965248  ;;  %v1038_v0 = vld [vmem:[#allocation5 + $0x4] ss:$8 sps:$4 sm:$0xff]   ;;  %v1040_v1 = vld [vmem:[#allocation5] ss:$8 sps:$4 sm:$0xff]  }
  0x5b   :  { %357 = vmatprep.subr.bf16.mxu0 %v1038_v0  ;;  %v1041_v2 = vld [vmem:[#allocation5 + $0x14] ss:$8 sps:$4 sm:$0xff]   ;;  %v1043_v3 = vld [vmem:[#allocation5 + $0x10] ss:$8 sps:$4 sm:$0xff]   ;;  %v1044_v4 = vld [vmem:[#allocation5 + $0x24] ss:$8 sps:$4 sm:$0xff]  }
  0x5c   :  { %358 = vmatpush1.bf16.msra.mxu0 %v1040_v1  ;;  %v1046_v5 = vld [vmem:[#allocation5 + $0x20] ss:$8 sps:$4 sm:$0xff]   ;;  %v1047_v6 = vld [vmem:[#allocation5 + $0x34] ss:$8 sps:$4 sm:$0xff]   ;;  %v1049_v7 = vld [vmem:[#allocation5 + $0x30] ss:$8 sps:$4 sm:$0xff]  }
  0x5d   :  { %359 = vmatprep.subr.bf16.mxu0 %v1041_v2  ;;  %v1050_v8 = vld [vmem:[#allocation5 + $0x44] ss:$8 sps:$4 sm:$0xff]   ;;  %v1052_v9 = vld [vmem:[#allocation5 + $0x40] ss:$8 sps:$4 sm:$0xff]   ;;  %v1053_v10 = vld [vmem:[#allocation5 + $0x54] ss:$8 sps:$4 sm:$0xff]   ;;  %v141_v2 = vlaneseq }
  0x5e   :  { %v1055_v11 = vld [vmem:[#allocation5 + $0x50] ss:$8 sps:$4 sm:$0xff]   ;;  %v1056_v12 = vld [vmem:[#allocation5 + $0x64] ss:$8 sps:$4 sm:$0xff]   ;;  %v1058_v15 = vld [vmem:[#allocation5 + $0x60] ss:$8 sps:$4 sm:$0xff]  }
  0x5f   :  { %v96_v13 = vld [vmem:[#allocation2 + $0x8] sm:$0xff]  ;;  %v1062_v18 = vld [vmem:[#allocation5 + $0x84] ss:$8 sps:$4 sm:$0xff]   ;;  %v1097_v19 = vld [vmem:[#allocation7 + $0x40] sm:$0xff]   ;;  %v1278_v52 = vmov 0   ;;  %vm350_vm0 = vcmask 1042432  }
  0x60   :  { %360 = vmatpush1.bf16.msra.mxu0 %v1043_v3  ;;  %v99_v14 = vpack.c.bf16 %v96_v13, %v96_v13  ;;  %v1059_v16 = vld [vmem:[#allocation5 + $0x74] ss:$8 sps:$4 sm:$0xff]   ;;  %v1061_v17 = vld [vmem:[#allocation5 + $0x70] ss:$8 sps:$4 sm:$0xff]   ;;  %v1064_v21 = vld [vmem:[#allocation5 + $0x80] ss:$8 sps:$4 sm:$0xff]   ;;  %939 = vmatprep.subr.bf16.mxu1 %v1097_v19 }
  0x61   :  { %361 = vmatprep.subr.bf16.mxu0 %v1044_v4  ;;  %v1098_v20 = vld [vmem:[#allocation7] sm:$0xff]   ;;  %v1099_v22 = vld [vmem:[#allocation7 + $0x48] sm:$0xff]   ;;  %v1101_v24 = vld [vmem:[#allocation7 + $0x50] sm:$0xff]   ;;  %vm346_vm1 = vcmask 441344   ;;  %v1279_v1 = vmov 0.0   ;;  %v142_v3 = vshrl.u32 %v141_v2, 7 }
  0x62   :  { %389 = vmatprep.mubr.bf16.mxu0 %v99_v14  ;;  %940 = vmatpush3.bf16.msra.mxu1 %v1098_v20  ;;  %v1100_v23 = vld [vmem:[#allocation7 + $0x8] sm:$0xff]   ;;  %v1065_v25 = vld [vmem:[#allocation5 + $0x94] ss:$8 sps:$4 sm:$0xff]   ;;  %v1067_v26 = vld [vmem:[#allocation5 + $0x90] ss:$8 sps:$4 sm:$0xff]   ;;  %vm1280_vm4 = vmmov 0  }
  0x63   :  { %941 = vmatprep.subr.bf16.mxu1 %v1099_v22  ;;  %v1102_v27 = vld [vmem:[#allocation7 + $0x10] sm:$0xff]   ;;  %v1103_v28 = vld [vmem:[#allocation7 + $0x58] sm:$0xff]   ;;  %v1105_v33 = vld [vmem:[#allocation7 + $0x60] sm:$0xff]   ;;  %v143_v4 = vsub.s32 0, %v142_v3  ;;  %s1281_s15 = smov [#allocation11]  }
  0x64   :  { %362 = vmatpush1.bf16.msra.mxu0 %v1046_v5  ;;  %v1068_v29 = vld [vmem:[#allocation5 + $0xa4] ss:$8 sps:$4 sm:$0xff]   ;;  %v1070_v30 = vld [vmem:[#allocation5 + $0xa0] ss:$8 sps:$4 sm:$0xff]   ;;  %v1071_v31 = vld [vmem:[#allocation5 + $0xb4] ss:$8 sps:$4 sm:$0xff]  }
  0x65   :  { %363 = vmatprep.subr.bf16.mxu0 %v1047_v6  ;;  %v1104_v32 = vld [vmem:[#allocation7 + $0x18] sm:$0xff]   ;;  %v1106_v34 = vld [vmem:[#allocation7 + $0x20] sm:$0xff]   ;;  %v1107_v36 = vld [vmem:[#allocation7 + $0x68] sm:$0xff]   ;;  %v147_v6 = vsub.s32 1, %v142_v3  ;;  %s851_s16 = sshll.u32 %s1281_s15, 4  ;;  %s852_s16 = int_to_ptr.vmem [resolvable:$true] %s851_s16 }
  0x66   :  { %942 = vmatpush3.bf16.msra.mxu1 %v1100_v23  ;;  %v1073_v35 = vld [vmem:[#allocation5 + $0xb0] ss:$8 sps:$4 sm:$0xff]   ;;  %v1074_v37 = vld [vmem:[#allocation5 + $0xc4] ss:$8 sps:$4 sm:$0xff]   ;;  %v1076_v39 = vld [vmem:[#allocation5 + $0xc0] ss:$8 sps:$4 sm:$0xff]   ;;  %p1244_p13 = scmp.lt.s32.totalorder %s852_s16, %s852_s16 }
  0x67   :  { %943 = vmatprep.subr.bf16.mxu1 %v1101_v24  ;;  %v1108_v38 = vld [vmem:[#allocation7 + $0x28] sm:$0xff]   ;;  %v1077_v40 = vld [vmem:[#allocation5 + $0xd4] ss:$8 sps:$4 sm:$0xff]   ;;  %v1079_v41 = vld [vmem:[#allocation5 + $0xd0] ss:$8 sps:$4 sm:$0xff]   ;;  %s1239_s17 = scalar_lea.vmem %s852_s16, 128 }
  0x68   :  { %364 = vmatpush1.bf16.msra.mxu0 %v1049_v7  ;;  %v1080_v42 = vld [vmem:[#allocation5 + $0xe4] ss:$8 sps:$4 sm:$0xff]   ;;  %v1082_v43 = vld [vmem:[#allocation5 + $0xe0] ss:$8 sps:$4 sm:$0xff]   ;;  %v1083_v44 = vld [vmem:[#allocation5 + $0xf4] ss:$8 sps:$4 sm:$0xff]   ;;  %p1240_p12 = scmp.ne.s32.totalorder %s852_s16, %s1239_s17  ;;  %p1245_p0 = scmp.lt.s32.totalorder %s1239_s17, %s1239_s17 }
  0x69   :  { %365 = vmatprep.subr.bf16.mxu0 %v1050_v8  ;;  %v1085_v45 = vld [vmem:[#allocation5 + $0xf0] ss:$8 sps:$4 sm:$0xff]   ;;  %v95_v46 = vld [vmem:[#allocation2] sm:$0xff]  ;;  %v1091_v50 = vld [vmem:[#allocation5 + $0x114] ss:$8 sps:$4 sm:$0xff]  }
  0x6a   :  { %944 = vmatpush3.bf16.msra.mxu1 %v1102_v27  ;;  %v1088_v47 = vld [vmem:[#allocation5 + $0x104] ss:$8 sps:$4 sm:$0xff]   ;;  %v98_v48 = vpack.c.bf16 %v95_v46, %v95_v46  ;;  %v1086_v49 = vld [vmem:[#allocation5 + $0x100] ss:$8 sps:$4 sm:$0xff]   ;;  %v1089_v51 = vld [vmem:[#allocation5 + $0x110] ss:$8 sps:$4 sm:$0xff]   ;;  %p1246_p1 = por %p1245_p0, %p1244_p13 }
  0x6b   :  { %945 = vmatprep.subr.bf16.mxu1 %v1103_v28  ;;  %v1094_v53 = vld [vmem:[#allocation5 + $0x124] ss:$8 sps:$4 sm:$0xff]   ;;  %v139_v54 = vld [vmem:[#allocation5 + $0x130] sm:$0x77]  ;;  %v1092_v55 = vld [vmem:[#allocation5 + $0x120] ss:$8 sps:$4 sm:$0xff]  }
  0x6c   :  { %366 = vmatpush1.bf16.msra.mxu0 %v1052_v9  ;;  %v901_v56 = vcombine.high %v139_v54, %v139_v54  ;;  %v900_v57 = vcombine.low %v139_v54, %v139_v54  ;;  %v97_v58 = vld [vmem:[#allocation2 + $0x10] sm:$0xff]  ;;  %v1109_v61 = vld [vmem:[#allocation7 + $0x70] sm:$0xff]   ;;  %v1111_v63 = vld [vmem:[#allocation7 + $0x78] sm:$0xff]   ;;  %p1247_p2 = pnand %p1246_p1, %p1240_p12 }
  0x6d   :  { %367 = vmatprep.subr.bf16.mxu0 %v1053_v10  ;;  %v100_v60 = vpack.c.bf16 %v97_v58, %v97_v58  ;;  %v1110_v62 = vld [vmem:[#allocation7 + $0x30] sm:$0xff]   ;;  %v1112_v0 = vld [vmem:[#allocation7 + $0x38] sm:$0xff]   ;;  %v1113_v20 = vld [vmem:[#allocation8] sm:$0xff]  }
  0x6e   :  { %946 = vmatpush3.bf16.msra.mxu1 %v1104_v32  ;;  %v352_v59 = vsel %vm350_vm0, %v900_v57, 0  ;;  %v91_v5 = vld [vmem:[%s1435_s5] ss:$4 sm:$0x3]  ;;  %v1114_v22 = vld [vmem:[#allocation8 + $0x8] sm:$0xff]   ;;  %v1116_v24 = vld [vmem:[#allocation8 + $0x18] sm:$0xff]  }
  0x6f   :  { %947 = vmatprep.subr.bf16.mxu1 %v1105_v33  ;;  %v144_v7 = vrot.slane %v91_v5, %v143_v4  ;;  %v148_v8 = vrot.slane %v91_v5, %v147_v6  ;;  %v1115_v23 = vld [vmem:[#allocation8 + $0x10] sm:$0xff]   ;;  %v1120_v28 = vld [vmem:[#allocation8 + $0x38] sm:$0xff]  }
  0x70   :  { %368 = vmatpush1.bf16.msra.mxu0 %v1055_v11  ;;  %v1119_v27 = vld [vmem:[#allocation8 + $0x30] sm:$0xff]   ;;  %v1128_v46 = vld [vmem:[#allocation10 + $0x38] sm:$0xff]  }
  0x71   :  { %369 = vmatprep.subr.bf16.mxu0 %v1056_v12 }
  0x72   :  { %948 = vmatpush3.bf16.msra.mxu1 %v1106_v34 }
  0x73   :  { %949 = vmatprep.subr.bf16.mxu1 %v1107_v36 }
  0x74   :  { %370 = vmatpush1.bf16.msra.mxu0 %v1058_v15 }
  0x75   :  { %371 = vmatprep.subr.bf16.mxu0 %v1059_v16 }
  0x76   :  { %950 = vmatpush3.bf16.msra.mxu1 %v1108_v38  ;;  %v1121_v38 = vld [vmem:[#allocation10] sm:$0xff]  }
  0x77   :  { %951 = vmatprep.subr.bf16.mxu1 %v1109_v61 }
  0x78   :  { %372 = vmatpush1.bf16.msra.mxu0 %v1061_v17 }
  0x79   :  { %373 = vmatprep.subr.bf16.mxu0 %v1062_v18 }
  0x7a   :  { %952 = vmatpush3.bf16.msra.mxu1 %v1110_v62 }
  0x7b   :  { %953 = vmatprep.subr.bf16.mxu1 %v1111_v63 }
  0x7c   :  { %374 = vmatpush1.bf16.msra.mxu0 %v1064_v21 }
  0x7d   :  { %375 = vmatprep.subr.bf16.mxu0 %v1065_v25  ;;  %v1117_v25 = vld [vmem:[#allocation8 + $0x20] sm:$0xff]  }
  0x7e   :  { %954 = vmatpush3.bf16.msra.mxu1 %v1112_v0 }
  0x7f   :  { %979 = vmatprep.subr.bf16.mxu1 %v1279_v1 }
  0x80   :  { %376 = vmatpush1.bf16.msra.mxu0 %v1067_v26  ;;  %v1118_v26 = vld [vmem:[#allocation8 + $0x28] sm:$0xff]  }
  0x81   :  { %377 = vmatprep.subr.bf16.mxu0 %v1068_v29 }
  0x84   :  { %378 = vmatpush1.bf16.msra.mxu0 %v1070_v30  ;;  %v904_v30 = vld [vmem:[%s1435_s5 + $0x1] ss:$0 sm:$0xff] }
  0x85   :  { %379 = vmatprep.subr.bf16.mxu0 %v1071_v31 }
  0x88   :  { %380 = vmatpush1.bf16.msra.mxu0 %v1073_v35 }
  0x89   :  { %381 = vmatprep.subr.bf16.mxu0 %v1074_v37 }
  0x8c   :  { %382 = vmatpush1.bf16.msra.mxu0 %v1076_v39 }
  0x8d   :  { %383 = vmatprep.subr.bf16.mxu0 %v1077_v40  ;;  %v1122_v40 = vld [vmem:[#allocation10 + $0x8] sm:$0xff]  }
  0x90   :  { %384 = vmatpush1.bf16.msra.mxu0 %v1079_v41  ;;  %v1123_v41 = vld [vmem:[#allocation10 + $0x10] sm:$0xff]  }
  0x91   :  { %385 = vmatprep.subr.bf16.mxu0 %v1080_v42  ;;  %v1124_v42 = vld [vmem:[#allocation10 + $0x18] sm:$0xff]  }
  0x94   :  { %386 = vmatpush1.bf16.msra.mxu0 %v1082_v43  ;;  %v1125_v43 = vld [vmem:[#allocation10 + $0x20] sm:$0xff]  }
  0x95   :  { %387 = vmatprep.subr.bf16.mxu0 %v1083_v44  ;;  %v1126_v44 = vld [vmem:[#allocation10 + $0x28] sm:$0xff]  }
  0x98   :  { %388 = vmatpush1.bf16.msra.mxu0 %v1085_v45  ;;  %v1127_v45 = vld [vmem:[#allocation10 + $0x30] sm:$0xff]  }
  0x99   :  { %398 = vmatprep.subr.bf16.mxu0 %v1088_v47  ;;  %v921_v47 = vld [vmem:[%s1435_s5 + $0x2] ss:$0 sm:$0xff] }
  0x9b   :  { %390 = vmatmul.mubr.bf16.vlgmr.msra.gmra.mrb[0].mxu0 %v98_v48 }
  0x9c   :  { %399 = vmatpush1.bf16.msra.mxu0 %v1086_v49  ;;  %430 = vmatprep.mubr.bf16.mxu0 %v1278_v52 }
  0x9d   :  { %400 = vmatprep.subr.bf16.mxu0 %v1091_v50 }
  0xa0   :  { %401 = vmatpush1.bf16.msra.mxu0 %v1089_v51 }
  0xa1   :  { %402 = vmatprep.subr.bf16.mxu0 %v1094_v53 }
  0xa4   :  { %403 = vmatpush1.bf16.msra.mxu0 %v1092_v55 }
  0xa5   :  { %902 = vmatprep.subr.msk.bf16.mxu0 %vm350_vm0, %v901_v56  ;;  %v930_v56 = vld [vmem:[%s1435_s5 + $0x3] ss:$0 sm:$0xff] }
  0xa8   :  { %405 = vmatpush1.bf16.msra.mxu0 %v352_v59 }
  0xab   :  { %903 = vmatmul.mubr.msk.bf16.vlgmr.msra.gmra.mrb[0].mxu0 %vm346_vm1, %v100_v60 }
 0x17e   :  { %v432_v9 = vpop.f32.mrb[0].mxu0 }
 0x17f   :  { %v1019_v10 = vadd.f32 %v432_v9, %v144_v7  ;;  %v434_v11 = vpop.f32.mrb[1].mxu0 }
 0x180   :  { %v1020_v12 = vadd.f32 %v434_v11, %v148_v8  ;;  %v436_v13 = vpop.f32.mrb[2].mxu0 }
 0x181   :  { %vm439_vm2 = vcmp.ge.f32.partialorder %v1019_v10, 0.0  ;;  %v441_v14 = vmul.f32 0.01, %v1019_v10  ;;  %v437_v15 = vpop.f32.mrb[3].mxu0 }
 0x182   :  { %vm440_vm3 = vcmp.ge.f32.partialorder %v1020_v12, 0.0  ;;  %v442_v16 = vmul.f32 0.01, %v1020_v12 }
 0x183   :  { %v443_v17 = vsel %vm439_vm2, %v1019_v10, %v441_v14 }
 0x184   :  { %v444_v18 = vsel %vm440_vm3, %v1020_v12, %v442_v16  ;;  %v445_v21 = vpack.c.bf16 %v443_v17, %v443_v17 }
 0x185   :  { %v446_v19 = vpack.c.bf16 %v444_v18, %v444_v18 }
 0x187   :  { %611 = vmatprep.mubr.bf16.mxu1 %v446_v19 }
 0x188   :  { %612 = vmatmul.mubr.bf16.vlgmr.msra.gmra.mrb[0].mxu1 %v445_v21 }
 0x189   :  { %980 = vmatpush3.bf16.msra.mxu1 %v1113_v20  ;;  %995 = vmatprep.mubr.msk.bf16.mxu1 %vm1280_vm4, %v1279_v1 }
 0x18a   :  { %981 = vmatprep.subr.bf16.mxu1 %v1279_v1 }
 0x18d   :  { %982 = vmatpush3.bf16.msra.mxu1 %v1114_v22 }
 0x18e   :  { %983 = vmatprep.subr.bf16.mxu1 %v1279_v1 }
 0x191   :  { %984 = vmatpush3.bf16.msra.mxu1 %v1115_v23 }
 0x192   :  { %985 = vmatprep.subr.bf16.mxu1 %v1279_v1 }
 0x195   :  { %986 = vmatpush3.bf16.msra.mxu1 %v1116_v24 }
 0x196   :  { %987 = vmatprep.subr.bf16.mxu1 %v1279_v1 }
 0x199   :  { %988 = vmatpush3.bf16.msra.mxu1 %v1117_v25 }
 0x19a   :  { %989 = vmatprep.subr.bf16.mxu1 %v1279_v1 }
 0x19d   :  { %990 = vmatpush3.bf16.msra.mxu1 %v1118_v26 }
 0x19e   :  { %991 = vmatprep.subr.bf16.mxu1 %v1279_v1 }
 0x1a1   :  { %992 = vmatpush3.bf16.msra.mxu1 %v1119_v27 }
 0x1a2   :  { %993 = vmatprep.subr.bf16.mxu1 %v1279_v1 }
 0x1a5   :  { %994 = vmatpush3.bf16.msra.mxu1 %v1120_v28 }
 0x1a6   :  { %999 = vmatprep.subr.bf16.mxu1 %v1279_v1 }
 0x25b   :  { %v955_v29 = vpop.f32.mrb[0].mxu1 }
 0x25c   :  { %v956_v31 = vpop.f32.mrb[1].mxu1 }
 0x25d   :  { %v957_v32 = vadd.f32 %v956_v31, %v955_v29  ;;  %v958_v33 = vpop.f32.mrb[2].mxu1 }
 0x25e   :  { %v959_v34 = vpop.f32.mrb[3].mxu1 }
 0x25f   :  { %v614_v35 = vadd.f32 %v957_v32, %v904_v30 }
 0x261   :  { %vm619_vm5 = vcmp.ge.f32.partialorder %v614_v35, 0.0  ;;  %v620_v36 = vmul.f32 0.01, %v614_v35 }
 0x263   :  { %v621_v37 = vsel %vm619_vm5, %v614_v35, %v620_v36 }
 0x264   :  { %v622_v39 = vpack.c.bf16 %v621_v37, %v621_v37 }
 0x266   :  { %996 = vmatmul.mubr.bf16.vlgmr.msra.gmra.mrb[4].mxu1 %v622_v39 }
 0x267   :  { %1000 = vmatpush3.bf16.msra.mxu1 %v1121_v38  ;;  %1015 = vmatprep.mubr.msk.bf16.mxu1 %vm1280_vm4, %v1279_v1 }
 0x268   :  { %1001 = vmatprep.subr.bf16.mxu1 %v1279_v1 }
 0x26b   :  { %1002 = vmatpush3.bf16.msra.mxu1 %v1122_v40 }
 0x26c   :  { %1003 = vmatprep.subr.bf16.mxu1 %v1279_v1 }
 0x26f   :  { %1004 = vmatpush3.bf16.msra.mxu1 %v1123_v41 }
 0x270   :  { %1005 = vmatprep.subr.bf16.mxu1 %v1279_v1 }
 0x273   :  { %1006 = vmatpush3.bf16.msra.mxu1 %v1124_v42 }
 0x274   :  { %1007 = vmatprep.subr.bf16.mxu1 %v1279_v1 }
 0x277   :  { %1008 = vmatpush3.bf16.msra.mxu1 %v1125_v43 }
 0x278   :  { %1009 = vmatprep.subr.bf16.mxu1 %v1279_v1 }
 0x27b   :  { %1010 = vmatpush3.bf16.msra.mxu1 %v1126_v44 }
 0x27c   :  { %1011 = vmatprep.subr.bf16.mxu1 %v1279_v1 }
 0x27f   :  { %1012 = vmatpush3.bf16.msra.mxu1 %v1127_v45 }
 0x280   :  { %1013 = vmatprep.subr.bf16.mxu1 %v1279_v1 }
 0x283   :  { %1014 = vmatpush3.bf16.msra.mxu1 %v1128_v46 }
 0x339   :  { %v725_v48 = vpop.f32.mrb[4].mxu1 }
 0x33a   :  { %v726_v49 = vadd.f32 %v921_v47, %v725_v48  ;;  %v997_v50 = vpop.f32.mrb[5].mxu1 }
 0x33b   :  { %v728_v51 = vpop.f32.mrb[6].mxu1 }
 0x33c   :  { %vm731_vm6 = vcmp.ge.f32.partialorder %v726_v49, 0.0  ;;  %v732_v52 = vmul.f32 0.01, %v726_v49  ;;  %v998_v53 = vpop.f32.mrb[7].mxu1 }
 0x33e   :  { %v733_v54 = vsel %vm731_vm6, %v726_v49, %v732_v52 }
 0x33f   :  { %v734_v55 = vpack.c.bf16 %v733_v54, %v733_v54 }
 0x341   :  { %1016 = vmatmul.mubr.bf16.vlgmr.msra.gmra.mrb[8].mxu1 %v734_v55 }
 0x414   :  { %v837_v57 = vpop.f32.mrb[8].mxu1 }
 0x415   :  { %v838_v58 = vadd.f32 %v930_v56, %v837_v57  ;;  %v1017_v59 = vpop.f32.mrb[9].mxu1 }
 0x416   :  { %v840_v60 = vpop.f32.mrb[10].mxu1 }
 0x417   :  { %v843_v61 = vadd.f32 %v838_v58, %v733_v54  ;;  %v1018_v62 = vpop.f32.mrb[11].mxu1 }
 0x419   :  { %844 = vst [vmem:[#allocation11] sm:$0xff] %v843_v61 }
 0x41a   :  { %1250 = shalt.err (!%p1247_p2)
}
 0x41b   :  { %s1251_s5 = scalar_lea.hbm %s1436_s6, 128 }
 0x41c   :  { %p1252_p3 = scmp.ne.s32.totalorder %s1436_s6, %s1251_s5  ;;  %p1255_p4 = scmp.lt.u32.totalorder %s1251_s5, %s1436_s6 }
 0x41e   :  { %p1257_p5 = pnand %p1255_p4, %p1252_p3 }
 0x420   :  { %1260 = shalt.err (!%p1257_p5)
}
 0x421   :  { %854 = dma.vmem_to_hbm [thread:$0]  %s852_s16, 128, %s1436_s6, [#allocation4]  }
 0x422   :  { %1267 = dma.done.wait [#allocation4], 128  }
 0x423   :  { %1268 = vsyncadd [#allocation4], 4294967168 }
 0x424   :  { %858 = vsyncpa [#allocation3], 1 }
 0x425   :  { %859 = vsyncpa [#allocation6], 1 }
 0x426   :  { %860 = vsyncpa [#allocation9], 1 }
 0x427   :  { %861 = vsyncpa [#allocation4], 1 }

</bundles_post_ra>
